<compile_context>
chip_gen: v6e
topology: v6e:2x2x1
jax: 0.10.0
libtpu: 0.0.40
codegen_flags: <defaults>
</compile_context>

<pallas_src>
import functools

import jax
import jax.numpy as jnp
from jax.experimental import pallas as pl
from jax.experimental.pallas import tpu as pltpu


def _lstm_fc_kernel(x_ref,      # (T*Bp, Din) f32   time-major-flattened input
                    wb_ref,     # (Din+1, 8H) f32   [wih0 | 0] rows, then [b0 | b1] row
                    w_big_ref,  # (2H, 8H)    bf16  [[whh0|wih1],[0|whh1]], interleaved cols
                    wfcb_ref,   # (H+1, Dout) f32   [wfc ; bfc]
                    out_ref,    # (Bp, Dout)  f32
                    *, T, Bp, H, Din):
    G = 2 * H  # packed gate-group width: [layer-0 | layer-1]

    # ---- one-time additive slab (off the recurrent critical path) -----------
    # Row block t holds [x(t)@wih0 + b0 | b1] in interleaved gate order.
    bias_row = wb_ref[Din:Din + 1, :]                                # (1, 8H)
    if Din == 1:
        # VPU broadcast multiply instead of a K=1 MXU outer product.
        add_all = x_ref[...] * wb_ref[0:1, :] + bias_row             # (T*Bp, 8H)
    else:
        add_all = (jnp.dot(x_ref[...], wb_ref[0:Din, :],
                           preferred_element_type=jnp.float32) + bias_row)

    w_big = w_big_ref[...]                                           # bf16 (2H, 8H)

    def fused_update(gates, c, h_dtype):
        # ONE full-tile sigmoid + ONE full-tile tanh, then 64-lane half-vreg
        # slices in interleaved gate order [i | f | g | o]; both layers' states
        # are updated in a single fused elementwise pass.
        sg = jax.nn.sigmoid(gates)
        th = jnp.tanh(gates)
        i = sg[:, 0 * G:1 * G]
        f = sg[:, 1 * G:2 * G]
        g = th[:, 2 * G:3 * G]
        o = sg[:, 3 * G:4 * G]
        c_new = f * c + i * g
        h_new = (o * jnp.tanh(c_new)).astype(h_dtype)
        return h_new, c_new

    # ---- prologue: t = 0 (recurrent matmul vanishes, h == 0) ----------------
    h, c = fused_update(add_all[0:Bp, :], jnp.zeros((Bp, G), jnp.float32),
                        jnp.float32)
    # Layer-1 has not run yet: zero its half of the packed state (the prologue's
    # layer-1 columns produced a spurious bias-only update).
    col = jax.lax.broadcasted_iota(jnp.int32, (Bp, G), 1)
    is_l0 = col < H
    h = jnp.where(is_l0, h, 0.0).astype(jnp.bfloat16)
    c = jnp.where(is_l0, c, 0.0)

    # ---- skewed, fully-unrolled recurrence -----------------------------------
    # Iteration t advances layer-0 to time t and layer-1 to time t-1 using ONE
    # (Bp, 2H) @ (2H, 8H) bf16 matmul (f32 accumulation) + one fused update.
    for t in range(1, T):
        gmm = jnp.dot(h, w_big, preferred_element_type=jnp.float32)  # (Bp, 8H)
        gates = gmm + add_all[t * Bp:(t + 1) * Bp, :]
        h, c = fused_update(gates, c, jnp.bfloat16)

    # ---- epilogue: layer-1 at the last time step ------------------------------
    # Full fused path reused; the layer-0 half (missing its x-term) is discarded.
    gmm = jnp.dot(h, w_big, preferred_element_type=jnp.float32)
    h_last, _ = fused_update(gmm + bias_row, c, jnp.float32)
    h1 = h_last[:, H:G]                                              # (Bp, H) f32

    # ---- fc on the last top-layer hidden state --------------------------------
    out_ref[...] = (jnp.dot(h1, wfcb_ref[0:H, :],
                            preferred_element_type=jnp.float32)
                    + wfcb_ref[H:H + 1, :]).astype(out_ref.dtype)


def lstm_forward(x, params):
    """x: (batch, seq, input_dim) -> (batch, output_dim); matches fc(lstm(x)[:, -1])."""
    B, T, Din = x.shape
    H = params["whh0"].shape[0]
    Dout = params["wfc"].shape[1]
    f32 = jnp.float32

    # Pad batch to a multiple of the sublane count (8).  Padded rows are fully
    # independent (batch is the M dim everywhere) and are sliced off at the end.
    Bp = -(-B // 8) * 8
    x_p = jnp.zeros((Bp, T, Din), f32).at[:B].set(x.astype(f32))
    # Time-major, flattened: row block [t*Bp, (t+1)*Bp) holds time step t, so the
    # per-step slab reads are sublane-aligned static slices.
    x_tm = jnp.transpose(x_p, (1, 0, 2)).reshape(T * Bp, Din)

    # Layer-interleaved gate-column order: [i0 i1 | f0 f1 | g0 g1 | o0 o1].
    # Column permutation is done once on weights here (free); the kernel's packed
    # (Bp, 2H) state then needs no per-step concatenate or realign.
    zH = jnp.zeros((H, H), f32)
    zD = jnp.zeros((Din, H), f32)
    big_cols, wb_cols = [], []
    for k in range(4):                       # gate groups i, f, g, o
        sl = slice(k * H, (k + 1) * H)
        # fused recurrent weights, rows = [h0 | h1]:
        big_cols.append(jnp.concatenate(
            [jnp.concatenate([params["whh0"][:, sl], params["wih1"][:, sl]], axis=1),
             jnp.concatenate([zH,                    params["whh1"][:, sl]], axis=1)],
            axis=0))                                                  # (2H, 2H)
        # additive slab constants, rows = [wih0 (Din rows) ; combined bias]:
        wb_cols.append(jnp.concatenate(
            [jnp.concatenate([params["wih0"][:, sl], zD], axis=1),
             jnp.concatenate([params["b0"][:, sl], params["b1"][:, sl]], axis=1)],
            axis=0))                                                  # (Din+1, 2H)
    w_big = jnp.concatenate(big_cols, axis=1).astype(jnp.bfloat16)    # (2H, 8H)
    wb = jnp.concatenate(wb_cols, axis=1)                             # (Din+1, 8H)
    wfcb = jnp.concatenate([params["wfc"], params["bfc"]], axis=0)    # (H+1, Dout)

    vmem = pl.BlockSpec(memory_space=pltpu.MemorySpace.VMEM)
    fn = pl.pallas_call(
        functools.partial(_lstm_fc_kernel, T=T, Bp=Bp, H=H, Din=Din),
        out_shape=jax.ShapeDtypeStruct((Bp, Dout), jnp.float32),
        in_specs=[vmem] * 4,
        out_specs=vmem,
    )
    out = fn(x_tm, wb, w_big, wfcb)
    return out[:B]


def init_params(key, input_dim=1, hidden_dim=32, output_dim=1):
    """Deterministic init mirroring PyTorch LSTM/Linear parameter shapes.

    PyTorch stores W_ih_l0: (4H, Din), W_hh_l0: (4H, H), b_ih/b_hh: (4H,),
    fc.weight: (Dout, H), fc.bias: (Dout,).  We pre-transpose the matmul
    weights and fold the two bias vectors per layer into one.
    """
    H = hidden_dim
    bound = 1.0 / jnp.sqrt(jnp.float32(H))
    ks = jax.random.split(key, 10)

    def u(k, shape):
        return jax.random.uniform(k, shape, jnp.float32, -bound, bound)

    # layer 0 (input_size = input_dim)
    w_ih0 = u(ks[0], (4 * H, input_dim))
    w_hh0 = u(ks[1], (4 * H, H))
    b_ih0 = u(ks[2], (4 * H,))
    b_hh0 = u(ks[3], (4 * H,))
    # layer 1 (input_size = hidden_dim)
    w_ih1 = u(ks[4], (4 * H, H))
    w_hh1 = u(ks[5], (4 * H, H))
    b_ih1 = u(ks[6], (4 * H,))
    b_hh1 = u(ks[7], (4 * H,))
    # fc
    w_fc = jax.random.uniform(ks[8], (output_dim, H), jnp.float32, -bound, bound)
    b_fc = jax.random.uniform(ks[9], (output_dim,), jnp.float32, -bound, bound)

    return {
        "wih0": w_ih0.T,                                   # (Din, 4H)
        "whh0": w_hh0.T,                                   # (H,   4H)
        "b0": (b_ih0 + b_hh0).reshape(1, 4 * H),           # (1,   4H)
        "wih1": w_ih1.T,                                   # (H,   4H)
        "whh1": w_hh1.T,                                   # (H,   4H)
        "b1": (b_ih1 + b_hh1).reshape(1, 4 * H),           # (1,   4H)
        "wfc": w_fc.T,                                     # (H,   Dout)
        "bfc": b_fc.reshape(1, output_dim),                # (1,   Dout)
    }


def lstm_reference(x, params):
    """Plain-JAX f32 reference for sanity checking the kernel."""
    B, T, Din = x.shape
    H = params["whh0"].shape[0]

    def cell(x_t, h, c, wih, whh, b):
        g = x_t @ wih + h @ whh + b
        i = jax.nn.sigmoid(g[:, 0 * H:1 * H])
        f = jax.nn.sigmoid(g[:, 1 * H:2 * H])
        gg = jnp.tanh(g[:, 2 * H:3 * H])
        o = jax.nn.sigmoid(g[:, 3 * H:4 * H])
        c = f * c + i * gg
        return o * jnp.tanh(c), c

    h0 = c0 = h1 = c1 = jnp.zeros((B, H), jnp.float32)
    for t in range(T):
        x_t = x[:, t, :].astype(jnp.float32)
        h0, c0 = cell(x_t, h0, c0, params["wih0"], params["whh0"], params["b0"])
        h1, c1 = cell(h0, h1, c1, params["wih1"], params["whh1"], params["b1"])
    return h1 @ params["wfc"] + params["bfc"]


if __name__ == "__main__":
    key = jax.random.PRNGKey(0)
    k_param, k_x = jax.random.split(key)

    batch, seq, input_dim, hidden_dim, output_dim = 2, 8, 1, 32, 1
    params = init_params(k_param, input_dim, hidden_dim, output_dim)
    x = jax.random.normal(k_x, (batch, seq, input_dim), jnp.float32)

    out = jax.block_until_ready(lstm_forward(x, params))
    ref = lstm_reference(x, params)

    assert out.shape == (batch, output_dim)
    # bf16 inputs on the recurrent matmuls (f32 accumulation) => slightly looser
    # tolerance against the pure-f32 reference.
    assert jnp.allclose(out, ref, atol=2e-2, rtol=2e-2), (out, ref)

    print("KERNEL_OK")
</pallas_src>

<mosaic_0001>
module attributes {stable_mosaic.version = 11 : i64} {
  func.func @_lstm_fc_kernel(%arg0: memref<64x1xf32, #tpu.memory_space<vmem>>, %arg1: memref<2x256xf32, #tpu.memory_space<vmem>>, %arg2: memref<64x256xbf16, #tpu.memory_space<vmem>>, %arg3: memref<33x1xf32, #tpu.memory_space<vmem>>, %arg4: memref<8x1xf32, #tpu.memory_space<vmem>>) attributes {dimension_semantics = [], scalar_prefetch = 0 : i64, scratch_operands = 0 : i64, tpu.core_type = #tpu.core_type<tc>} {
    %c1 = arith.constant 1 : index
    %c0 = arith.constant 0 : index
    %0 = vector.load %arg1[%c1, %c0] : memref<2x256xf32, #tpu.memory_space<vmem>>, vector<1x256xf32>
    %c0_0 = arith.constant 0 : index
    %c0_1 = arith.constant 0 : index
    %1 = vector.load %arg0[%c0_0, %c0_1] : memref<64x1xf32, #tpu.memory_space<vmem>>, vector<64x1xf32>
    %c0_2 = arith.constant 0 : index
    %c0_3 = arith.constant 0 : index
    %2 = vector.load %arg1[%c0_2, %c0_3] : memref<2x256xf32, #tpu.memory_space<vmem>>, vector<1x256xf32>
    %3 = vector.broadcast %1 : vector<64x1xf32> to vector<64x256xf32>
    %4 = vector.broadcast %2 : vector<1x256xf32> to vector<64x256xf32>
    %5 = arith.mulf %3, %4 : vector<64x256xf32>
    %6 = vector.broadcast %0 : vector<1x256xf32> to vector<64x256xf32>
    %7 = arith.addf %5, %6 : vector<64x256xf32>
    %c0_4 = arith.constant 0 : index
    %c0_5 = arith.constant 0 : index
    %8 = vector.load %arg2[%c0_4, %c0_5] : memref<64x256xbf16, #tpu.memory_space<vmem>>, vector<64x256xbf16>
    %9 = vector.extract_strided_slice %7 {offsets = [0, 0], sizes = [8, 256], strides = [1, 1]} : vector<64x256xf32> to vector<8x256xf32>
    %cst = arith.constant 0.000000e+00 : f32
    %10 = vector.broadcast %cst : f32 to vector<8x64xf32>
    %11 = arith.negf %9 : vector<8x256xf32>
    %12 = math.exp %11 : vector<8x256xf32>
    %cst_6 = arith.constant 1.000000e+00 : f32
    %13 = vector.broadcast %cst_6 : f32 to vector<8x256xf32>
    %14 = arith.addf %13, %12 : vector<8x256xf32>
    %15 = arith.divf %13, %14 : vector<8x256xf32>
    %16 = math.tanh %9 : vector<8x256xf32>
    %17 = vector.extract_strided_slice %15 {offsets = [0, 0], sizes = [8, 64], strides = [1, 1]} : vector<8x256xf32> to vector<8x64xf32>
    %18 = vector.extract_strided_slice %15 {offsets = [0, 64], sizes = [8, 64], strides = [1, 1]} : vector<8x256xf32> to vector<8x64xf32>
    %19 = vector.extract_strided_slice %16 {offsets = [0, 128], sizes = [8, 64], strides = [1, 1]} : vector<8x256xf32> to vector<8x64xf32>
    %20 = vector.extract_strided_slice %15 {offsets = [0, 192], sizes = [8, 64], strides = [1, 1]} : vector<8x256xf32> to vector<8x64xf32>
    %21 = arith.mulf %18, %10 : vector<8x64xf32>
    %22 = arith.mulf %17, %19 : vector<8x64xf32>
    %23 = arith.addf %21, %22 : vector<8x64xf32>
    %24 = math.tanh %23 : vector<8x64xf32>
    %25 = arith.mulf %20, %24 : vector<8x64xf32>
    %26 = tpu.iota {dimensions = array<i32: 1>} : vector<8x64xi32>
    %c32_i32 = arith.constant 32 : i32
    %27 = vector.broadcast %c32_i32 : i32 to vector<8x64xi32>
    %28 = arith.cmpi slt, %26, %27 : vector<8x64xi32>
    %cst_7 = arith.constant 0.000000e+00 : f32
    %29 = vector.broadcast %cst_7 : f32 to vector<8x64xf32>
    %30 = arith.select %28, %25, %29 : vector<8x64xi1>, vector<8x64xf32>
    %31 = arith.truncf %30 : vector<8x64xf32> to vector<8x64xbf16>
    %cst_8 = arith.constant 0.000000e+00 : f32
    %32 = vector.broadcast %cst_8 : f32 to vector<8x64xf32>
    %33 = arith.select %28, %23, %32 : vector<8x64xi1>, vector<8x64xf32>
    %cst_9 = arith.constant dense<0.000000e+00> : vector<8x256xf32>
    %34 = tpu.matmul %31, %8, %cst_9 {dimension_numbers = #tpu.dot_dimension_numbers<[1], [0], [0], [1], [0, 0, 1, 1], [], []>} : vector<8x64xbf16>, vector<64x256xbf16>, vector<8x256xf32> -> vector<8x256xf32>
    %35 = vector.extract_strided_slice %7 {offsets = [8, 0], sizes = [8, 256], strides = [1, 1]} : vector<64x256xf32> to vector<8x256xf32>
    %36 = arith.addf %34, %35 : vector<8x256xf32>
    %37 = arith.negf %36 : vector<8x256xf32>
    %38 = math.exp %37 : vector<8x256xf32>
    %cst_10 = arith.constant 1.000000e+00 : f32
    %39 = vector.broadcast %cst_10 : f32 to vector<8x256xf32>
    %40 = arith.addf %39, %38 : vector<8x256xf32>
    %41 = arith.divf %39, %40 : vector<8x256xf32>
    %42 = math.tanh %36 : vector<8x256xf32>
    %43 = vector.extract_strided_slice %41 {offsets = [0, 0], sizes = [8, 64], strides = [1, 1]} : vector<8x256xf32> to vector<8x64xf32>
    %44 = vector.extract_strided_slice %41 {offsets = [0, 64], sizes = [8, 64], strides = [1, 1]} : vector<8x256xf32> to vector<8x64xf32>
    %45 = vector.extract_strided_slice %42 {offsets = [0, 128], sizes = [8, 64], strides = [1, 1]} : vector<8x256xf32> to vector<8x64xf32>
    %46 = vector.extract_strided_slice %41 {offsets = [0, 192], sizes = [8, 64], strides = [1, 1]} : vector<8x256xf32> to vector<8x64xf32>
    %47 = arith.mulf %44, %33 : vector<8x64xf32>
    %48 = arith.mulf %43, %45 : vector<8x64xf32>
    %49 = arith.addf %47, %48 : vector<8x64xf32>
    %50 = math.tanh %49 : vector<8x64xf32>
    %51 = arith.mulf %46, %50 : vector<8x64xf32>
    %52 = arith.truncf %51 : vector<8x64xf32> to vector<8x64xbf16>
    %cst_11 = arith.constant dense<0.000000e+00> : vector<8x256xf32>
    %53 = tpu.matmul %52, %8, %cst_11 {dimension_numbers = #tpu.dot_dimension_numbers<[1], [0], [0], [1], [0, 0, 1, 1], [], []>} : vector<8x64xbf16>, vector<64x256xbf16>, vector<8x256xf32> -> vector<8x256xf32>
    %54 = vector.extract_strided_slice %7 {offsets = [16, 0], sizes = [8, 256], strides = [1, 1]} : vector<64x256xf32> to vector<8x256xf32>
    %55 = arith.addf %53, %54 : vector<8x256xf32>
    %56 = arith.negf %55 : vector<8x256xf32>
    %57 = math.exp %56 : vector<8x256xf32>
    %cst_12 = arith.constant 1.000000e+00 : f32
    %58 = vector.broadcast %cst_12 : f32 to vector<8x256xf32>
    %59 = arith.addf %58, %57 : vector<8x256xf32>
    %60 = arith.divf %58, %59 : vector<8x256xf32>
    %61 = math.tanh %55 : vector<8x256xf32>
    %62 = vector.extract_strided_slice %60 {offsets = [0, 0], sizes = [8, 64], strides = [1, 1]} : vector<8x256xf32> to vector<8x64xf32>
    %63 = vector.extract_strided_slice %60 {offsets = [0, 64], sizes = [8, 64], strides = [1, 1]} : vector<8x256xf32> to vector<8x64xf32>
    %64 = vector.extract_strided_slice %61 {offsets = [0, 128], sizes = [8, 64], strides = [1, 1]} : vector<8x256xf32> to vector<8x64xf32>
    %65 = vector.extract_strided_slice %60 {offsets = [0, 192], sizes = [8, 64], strides = [1, 1]} : vector<8x256xf32> to vector<8x64xf32>
    %66 = arith.mulf %63, %49 : vector<8x64xf32>
    %67 = arith.mulf %62, %64 : vector<8x64xf32>
    %68 = arith.addf %66, %67 : vector<8x64xf32>
    %69 = math.tanh %68 : vector<8x64xf32>
    %70 = arith.mulf %65, %69 : vector<8x64xf32>
    %71 = arith.truncf %70 : vector<8x64xf32> to vector<8x64xbf16>
    %cst_13 = arith.constant dense<0.000000e+00> : vector<8x256xf32>
    %72 = tpu.matmul %71, %8, %cst_13 {dimension_numbers = #tpu.dot_dimension_numbers<[1], [0], [0], [1], [0, 0, 1, 1], [], []>} : vector<8x64xbf16>, vector<64x256xbf16>, vector<8x256xf32> -> vector<8x256xf32>
    %73 = vector.extract_strided_slice %7 {offsets = [24, 0], sizes = [8, 256], strides = [1, 1]} : vector<64x256xf32> to vector<8x256xf32>
    %74 = arith.addf %72, %73 : vector<8x256xf32>
    %75 = arith.negf %74 : vector<8x256xf32>
    %76 = math.exp %75 : vector<8x256xf32>
    %cst_14 = arith.constant 1.000000e+00 : f32
    %77 = vector.broadcast %cst_14 : f32 to vector<8x256xf32>
    %78 = arith.addf %77, %76 : vector<8x256xf32>
    %79 = arith.divf %77, %78 : vector<8x256xf32>
    %80 = math.tanh %74 : vector<8x256xf32>
    %81 = vector.extract_strided_slice %79 {offsets = [0, 0], sizes = [8, 64], strides = [1, 1]} : vector<8x256xf32> to vector<8x64xf32>
    %82 = vector.extract_strided_slice %79 {offsets = [0, 64], sizes = [8, 64], strides = [1, 1]} : vector<8x256xf32> to vector<8x64xf32>
    %83 = vector.extract_strided_slice %80 {offsets = [0, 128], sizes = [8, 64], strides = [1, 1]} : vector<8x256xf32> to vector<8x64xf32>
    %84 = vector.extract_strided_slice %79 {offsets = [0, 192], sizes = [8, 64], strides = [1, 1]} : vector<8x256xf32> to vector<8x64xf32>
    %85 = arith.mulf %82, %68 : vector<8x64xf32>
    %86 = arith.mulf %81, %83 : vector<8x64xf32>
    %87 = arith.addf %85, %86 : vector<8x64xf32>
    %88 = math.tanh %87 : vector<8x64xf32>
    %89 = arith.mulf %84, %88 : vector<8x64xf32>
    %90 = arith.truncf %89 : vector<8x64xf32> to vector<8x64xbf16>
    %cst_15 = arith.constant dense<0.000000e+00> : vector<8x256xf32>
    %91 = tpu.matmul %90, %8, %cst_15 {dimension_numbers = #tpu.dot_dimension_numbers<[1], [0], [0], [1], [0, 0, 1, 1], [], []>} : vector<8x64xbf16>, vector<64x256xbf16>, vector<8x256xf32> -> vector<8x256xf32>
    %92 = vector.extract_strided_slice %7 {offsets = [32, 0], sizes = [8, 256], strides = [1, 1]} : vector<64x256xf32> to vector<8x256xf32>
    %93 = arith.addf %91, %92 : vector<8x256xf32>
    %94 = arith.negf %93 : vector<8x256xf32>
    %95 = math.exp %94 : vector<8x256xf32>
    %cst_16 = arith.constant 1.000000e+00 : f32
    %96 = vector.broadcast %cst_16 : f32 to vector<8x256xf32>
    %97 = arith.addf %96, %95 : vector<8x256xf32>
    %98 = arith.divf %96, %97 : vector<8x256xf32>
    %99 = math.tanh %93 : vector<8x256xf32>
    %100 = vector.extract_strided_slice %98 {offsets = [0, 0], sizes = [8, 64], strides = [1, 1]} : vector<8x256xf32> to vector<8x64xf32>
    %101 = vector.extract_strided_slice %98 {offsets = [0, 64], sizes = [8, 64], strides = [1, 1]} : vector<8x256xf32> to vector<8x64xf32>
    %102 = vector.extract_strided_slice %99 {offsets = [0, 128], sizes = [8, 64], strides = [1, 1]} : vector<8x256xf32> to vector<8x64xf32>
    %103 = vector.extract_strided_slice %98 {offsets = [0, 192], sizes = [8, 64], strides = [1, 1]} : vector<8x256xf32> to vector<8x64xf32>
    %104 = arith.mulf %101, %87 : vector<8x64xf32>
    %105 = arith.mulf %100, %102 : vector<8x64xf32>
    %106 = arith.addf %104, %105 : vector<8x64xf32>
    %107 = math.tanh %106 : vector<8x64xf32>
    %108 = arith.mulf %103, %107 : vector<8x64xf32>
    %109 = arith.truncf %108 : vector<8x64xf32> to vector<8x64xbf16>
    %cst_17 = arith.constant dense<0.000000e+00> : vector<8x256xf32>
    %110 = tpu.matmul %109, %8, %cst_17 {dimension_numbers = #tpu.dot_dimension_numbers<[1], [0], [0], [1], [0, 0, 1, 1], [], []>} : vector<8x64xbf16>, vector<64x256xbf16>, vector<8x256xf32> -> vector<8x256xf32>
    %111 = vector.extract_strided_slice %7 {offsets = [40, 0], sizes = [8, 256], strides = [1, 1]} : vector<64x256xf32> to vector<8x256xf32>
    %112 = arith.addf %110, %111 : vector<8x256xf32>
    %113 = arith.negf %112 : vector<8x256xf32>
    %114 = math.exp %113 : vector<8x256xf32>
    %cst_18 = arith.constant 1.000000e+00 : f32
    %115 = vector.broadcast %cst_18 : f32 to vector<8x256xf32>
    %116 = arith.addf %115, %114 : vector<8x256xf32>
    %117 = arith.divf %115, %116 : vector<8x256xf32>
    %118 = math.tanh %112 : vector<8x256xf32>
    %119 = vector.extract_strided_slice %117 {offsets = [0, 0], sizes = [8, 64], strides = [1, 1]} : vector<8x256xf32> to vector<8x64xf32>
    %120 = vector.extract_strided_slice %117 {offsets = [0, 64], sizes = [8, 64], strides = [1, 1]} : vector<8x256xf32> to vector<8x64xf32>
    %121 = vector.extract_strided_slice %118 {offsets = [0, 128], sizes = [8, 64], strides = [1, 1]} : vector<8x256xf32> to vector<8x64xf32>
    %122 = vector.extract_strided_slice %117 {offsets = [0, 192], sizes = [8, 64], strides = [1, 1]} : vector<8x256xf32> to vector<8x64xf32>
    %123 = arith.mulf %120, %106 : vector<8x64xf32>
    %124 = arith.mulf %119, %121 : vector<8x64xf32>
    %125 = arith.addf %123, %124 : vector<8x64xf32>
    %126 = math.tanh %125 : vector<8x64xf32>
    %127 = arith.mulf %122, %126 : vector<8x64xf32>
    %128 = arith.truncf %127 : vector<8x64xf32> to vector<8x64xbf16>
    %cst_19 = arith.constant dense<0.000000e+00> : vector<8x256xf32>
    %129 = tpu.matmul %128, %8, %cst_19 {dimension_numbers = #tpu.dot_dimension_numbers<[1], [0], [0], [1], [0, 0, 1, 1], [], []>} : vector<8x64xbf16>, vector<64x256xbf16>, vector<8x256xf32> -> vector<8x256xf32>
    %130 = vector.extract_strided_slice %7 {offsets = [48, 0], sizes = [8, 256], strides = [1, 1]} : vector<64x256xf32> to vector<8x256xf32>
    %131 = arith.addf %129, %130 : vector<8x256xf32>
    %132 = arith.negf %131 : vector<8x256xf32>
    %133 = math.exp %132 : vector<8x256xf32>
    %cst_20 = arith.constant 1.000000e+00 : f32
    %134 = vector.broadcast %cst_20 : f32 to vector<8x256xf32>
    %135 = arith.addf %134, %133 : vector<8x256xf32>
    %136 = arith.divf %134, %135 : vector<8x256xf32>
    %137 = math.tanh %131 : vector<8x256xf32>
    %138 = vector.extract_strided_slice %136 {offsets = [0, 0], sizes = [8, 64], strides = [1, 1]} : vector<8x256xf32> to vector<8x64xf32>
    %139 = vector.extract_strided_slice %136 {offsets = [0, 64], sizes = [8, 64], strides = [1, 1]} : vector<8x256xf32> to vector<8x64xf32>
    %140 = vector.extract_strided_slice %137 {offsets = [0, 128], sizes = [8, 64], strides = [1, 1]} : vector<8x256xf32> to vector<8x64xf32>
    %141 = vector.extract_strided_slice %136 {offsets = [0, 192], sizes = [8, 64], strides = [1, 1]} : vector<8x256xf32> to vector<8x64xf32>
    %142 = arith.mulf %139, %125 : vector<8x64xf32>
    %143 = arith.mulf %138, %140 : vector<8x64xf32>
    %144 = arith.addf %142, %143 : vector<8x64xf32>
    %145 = math.tanh %144 : vector<8x64xf32>
    %146 = arith.mulf %141, %145 : vector<8x64xf32>
    %147 = arith.truncf %146 : vector<8x64xf32> to vector<8x64xbf16>
    %cst_21 = arith.constant dense<0.000000e+00> : vector<8x256xf32>
    %148 = tpu.matmul %147, %8, %cst_21 {dimension_numbers = #tpu.dot_dimension_numbers<[1], [0], [0], [1], [0, 0, 1, 1], [], []>} : vector<8x64xbf16>, vector<64x256xbf16>, vector<8x256xf32> -> vector<8x256xf32>
    %149 = vector.extract_strided_slice %7 {offsets = [56, 0], sizes = [8, 256], strides = [1, 1]} : vector<64x256xf32> to vector<8x256xf32>
    %150 = arith.addf %148, %149 : vector<8x256xf32>
    %151 = arith.negf %150 : vector<8x256xf32>
    %152 = math.exp %151 : vector<8x256xf32>
    %cst_22 = arith.constant 1.000000e+00 : f32
    %153 = vector.broadcast %cst_22 : f32 to vector<8x256xf32>
    %154 = arith.addf %153, %152 : vector<8x256xf32>
    %155 = arith.divf %153, %154 : vector<8x256xf32>
    %156 = math.tanh %150 : vector<8x256xf32>
    %157 = vector.extract_strided_slice %155 {offsets = [0, 0], sizes = [8, 64], strides = [1, 1]} : vector<8x256xf32> to vector<8x64xf32>
    %158 = vector.extract_strided_slice %155 {offsets = [0, 64], sizes = [8, 64], strides = [1, 1]} : vector<8x256xf32> to vector<8x64xf32>
    %159 = vector.extract_strided_slice %156 {offsets = [0, 128], sizes = [8, 64], strides = [1, 1]} : vector<8x256xf32> to vector<8x64xf32>
    %160 = vector.extract_strided_slice %155 {offsets = [0, 192], sizes = [8, 64], strides = [1, 1]} : vector<8x256xf32> to vector<8x64xf32>
    %161 = arith.mulf %158, %144 : vector<8x64xf32>
    %162 = arith.mulf %157, %159 : vector<8x64xf32>
    %163 = arith.addf %161, %162 : vector<8x64xf32>
    %164 = math.tanh %163 : vector<8x64xf32>
    %165 = arith.mulf %160, %164 : vector<8x64xf32>
    %166 = arith.truncf %165 : vector<8x64xf32> to vector<8x64xbf16>
    %cst_23 = arith.constant dense<0.000000e+00> : vector<8x256xf32>
    %167 = tpu.matmul %166, %8, %cst_23 {dimension_numbers = #tpu.dot_dimension_numbers<[1], [0], [0], [1], [0, 0, 1, 1], [], []>} : vector<8x64xbf16>, vector<64x256xbf16>, vector<8x256xf32> -> vector<8x256xf32>
    %168 = vector.broadcast %0 : vector<1x256xf32> to vector<8x256xf32>
    %169 = arith.addf %167, %168 : vector<8x256xf32>
    %170 = arith.negf %169 : vector<8x256xf32>
    %171 = math.exp %170 : vector<8x256xf32>
    %cst_24 = arith.constant 1.000000e+00 : f32
    %172 = vector.broadcast %cst_24 : f32 to vector<8x256xf32>
    %173 = arith.addf %172, %171 : vector<8x256xf32>
    %174 = arith.divf %172, %173 : vector<8x256xf32>
    %175 = math.tanh %169 : vector<8x256xf32>
    %176 = vector.extract_strided_slice %174 {offsets = [0, 0], sizes = [8, 64], strides = [1, 1]} : vector<8x256xf32> to vector<8x64xf32>
    %177 = vector.extract_strided_slice %174 {offsets = [0, 64], sizes = [8, 64], strides = [1, 1]} : vector<8x256xf32> to vector<8x64xf32>
    %178 = vector.extract_strided_slice %175 {offsets = [0, 128], sizes = [8, 64], strides = [1, 1]} : vector<8x256xf32> to vector<8x64xf32>
    %179 = vector.extract_strided_slice %174 {offsets = [0, 192], sizes = [8, 64], strides = [1, 1]} : vector<8x256xf32> to vector<8x64xf32>
    %180 = arith.mulf %177, %163 : vector<8x64xf32>
    %181 = arith.mulf %176, %178 : vector<8x64xf32>
    %182 = arith.addf %180, %181 : vector<8x64xf32>
    %183 = math.tanh %182 : vector<8x64xf32>
    %184 = arith.mulf %179, %183 : vector<8x64xf32>
    %185 = vector.extract_strided_slice %184 {offsets = [0, 32], sizes = [8, 32], strides = [1, 1]} : vector<8x64xf32> to vector<8x32xf32>
    %c0_25 = arith.constant 0 : index
    %c0_26 = arith.constant 0 : index
    %186 = vector.load %arg3[%c0_25, %c0_26] : memref<33x1xf32, #tpu.memory_space<vmem>>, vector<32x1xf32>
    %cst_27 = arith.constant dense<0.000000e+00> : vector<8x1xf32>
    %187 = tpu.matmul %185, %186, %cst_27 {dimension_numbers = #tpu.dot_dimension_numbers<[1], [0], [0], [1], [0, 0, 1, 1], [], []>} : vector<8x32xf32>, vector<32x1xf32>, vector<8x1xf32> -> vector<8x1xf32>
    %c32 = arith.constant 32 : index
    %c0_28 = arith.constant 0 : index
    %188 = vector.load %arg3[%c32, %c0_28] : memref<33x1xf32, #tpu.memory_space<vmem>>, vector<1x1xf32>
    %189 = vector.broadcast %188 : vector<1x1xf32> to vector<8x1xf32>
    %190 = arith.addf %187, %189 : vector<8x1xf32>
    %c0_29 = arith.constant 0 : index
    %c0_30 = arith.constant 0 : index
    %191 = vector.load %arg4[%c0_29, %c0_30] : memref<8x1xf32, #tpu.memory_space<vmem>>, vector<8x1xf32>
    tpu.vector_store %arg4[%c0_29, %c0_30], %190 {strides = array<i32>} : memref<8x1xf32, #tpu.memory_space<vmem>>, vector<8x1xf32>,
    return
  }
}

</mosaic_0001>

<bundles_post_ra>
// kernel: tpu_custom_call.1
= control target key start
LH: loop header
LB: loop body
LE: loop exit
PB: predicated region body
PF: predicated region fallthrough
CT: control target
= control target key end

     0   :  { %v1039_v0 = vmov 0   ;;  %v70_v2 = vlaneseq  ;;  %vm207_vm1 = vcmask 523264   ;;  %vm1042_vm2 = vmmov 0   ;;  %s1043_s30 = smov 32   ;;  %s1302_s0 = inlined_call_operand.vmem [shape: f32[64,1], index: 0, kind: input, shape index: {}]   ;;  %s1303_s1 = inlined_call_operand.vmem [shape: f32[2,256], index: 1, kind: input, shape index: {}]   ;;  %s1304_s2 = inlined_call_operand.vmem [shape: bf16[64,256], index: 2, kind: input, shape index: {}]   ;;  %s1305_s3 = inlined_call_operand.vmem [shape: f32[33,1], index: 3, kind: input, shape index: {}]   ;;  %s1306_s4 = inlined_call_operand.vmem [shape: f32[8,1], index: 4, kind: output, shape index: {}]  }
   0x1   :  { %917 = vset.pattern.permute.xlu0 %v1039_v0  ;;  %v20_v1 = vld [vmem:[%s1302_s0] sm:$0xff]  ;;  %918 = vset.pattern.permute.xlu1 %v1039_v0  ;;  %v1099_v24 = vld [vmem:[%s1304_s2 + $0x34] ss:$8 sps:$4 sm:$0xff]   ;;  %v1104_v25 = vld [vmem:[%s1304_s2 + $0x30] ss:$8 sps:$4 sm:$0xff]   ;;  %vm780_vm3 = vcmask 261120  }
   0x2   :  { %31 = vperm.xlu0 %917, %v20_v1   ;;  %243 = vmatprep.mubr.bf16.mxu0 %v1039_v0  ;;  %v71_v3 = vshrl.u32 %v70_v2, 7  ;;  %v28_v5 = vld [vmem:[%s1303_s1] ss:$2 sm:$0x3]  ;;  %v1110_v26 = vld [vmem:[%s1304_s2 + $0x24] ss:$8 sps:$4 sm:$0xff]  }
   0x3   :  { %317 = vmatprep.mubr.bf16.mxu1 %v1039_v0  ;;  %v859_v6 = vld [vmem:[%s1303_s1 + $0x1] ss:$2 sm:$0x3]  ;;  %s1040_s1 = smov 64   ;;  %219 = vmatprep.subr.bf16.mxu0 %v1099_v24  ;;  %v1124_v29 = vld [vmem:[%s1304_s2 + $0x14] ss:$8 sps:$4 sm:$0xff]  }
   0x4   :  { %v72_v4 = vsub.s32 0, %v71_v3  ;;  %v76_v13 = vsub.s32 1, %v71_v3  ;;  %293 = vmatprep.subr.bf16.mxu1 %v1099_v24  ;;  %220 = vmatpush1.bf16.msra.mxu0 %v1104_v25  ;;  %v1117_v28 = vld [vmem:[%s1304_s2 + $0x20] ss:$8 sps:$4 sm:$0xff]   ;;  %v1131_v32 = vld [vmem:[%s1304_s2 + $0x10] ss:$8 sps:$4 sm:$0xff]  }
   0x5   :  { %294 = vmatpush1.bf16.msra.mxu1 %v1104_v25  ;;  %221 = vmatprep.subr.bf16.mxu0 %v1110_v26  ;;  %v1138_v34 = vld [vmem:[%s1304_s2 + $0x4] ss:$8 sps:$4 sm:$0xff]   ;;  %v1148_v36 = vld [vmem:[%s1304_s2] ss:$8 sps:$4 sm:$0xff]   ;;  %v154_v41 = vand.u32 127, %v70_v2  ;;  %v22_v1 = vld [vmem:[%s1302_s0 + $0x10] sm:$0xff] }
   0x6   :  { %v1083_v7 = vrot.slane %v28_v5, %v72_v4  ;;  %v1085_v8 = vrot.slane %v859_v6, %v72_v4  ;;  %v1089_v14 = vrot.slane %v28_v5, %v76_v13  ;;  %v1091_v15 = vrot.slane %v859_v6, %v76_v13  ;;  %295 = vmatprep.subr.bf16.mxu1 %v1110_v26  ;;  %v21_v40 = vld [vmem:[%s1302_s0 + $0x8] sm:$0xff] }
   0x7   :  { %vm155_vm0 = vcmp.lt.s32.totalorder %v154_v41, 32  ;;  %vm853_vm4 = vcmask 7168  }
   0x8   :  { %222 = vmatpush1.bf16.msra.mxu0 %v1117_v28 }
   0x9   :  { %296 = vmatpush1.bf16.msra.mxu1 %v1117_v28  ;;  %223 = vmatprep.subr.bf16.mxu0 %v1124_v29 }
   0xa   :  { %297 = vmatprep.subr.bf16.mxu1 %v1124_v29 }
   0xc   :  { %224 = vmatpush1.bf16.msra.mxu0 %v1131_v32 }
   0xd   :  { %225 = vmatprep.subr.bf16.mxu0 %v1138_v34  ;;  %298 = vmatpush1.bf16.msra.mxu1 %v1131_v32 }
   0xe   :  { %299 = vmatprep.subr.bf16.mxu1 %v1138_v34 }
  0x10   :  { %226 = vmatpush1.bf16.msra.mxu0 %v1148_v36 }
  0x11   :  { %300 = vmatpush1.bf16.msra.mxu1 %v1148_v36  ;;  %363 = vmatprep.subr.bf16.mxu0 %v1099_v24 }
  0x12   :  { %433 = vmatprep.subr.bf16.mxu1 %v1099_v24 }
  0x7d   :  { %v32_v9 = vpop.permute.xlu0 %31 }
  0x7e   :  { %v80_v10 = vmul.f32 %v1083_v7, %v32_v9  ;;  %v81_v16 = vmul.f32 %v1089_v14, %v32_v9 }
  0x80   :  { %v107_v11 = vadd.f32 %v1085_v8, %v80_v10  ;;  %v108_v17 = vadd.f32 %v1091_v15, %v81_v16 }
  0x82   :  { %v860_v12 = vmul.f32 -1.442695, %v107_v11  ;;  %v861_v23 = vmul.f32 -1.442695, %v108_v17 }
  0x84   :  { %931 = vpow2.f32 %v860_v12 }
  0x85   :  { %933 = vtanh.f32 %v108_v17 }
  0x91   :  { %v932_v18 = vpop.eup %931 }
  0x92   :  { %v137_v19 = vadd.f32 1.0, %v932_v18  ;;  %v934_v20 = vpop.eup %933 }
  0x94   :  { %935 = vrcp.f32 %v137_v19 }
  0x95   :  { %937 = vpow2.f32 %v861_v23 }
  0xa1   :  { %v936_v21 = vpop.eup %935 }
  0xa2   :  { %v145_v22 = vmul.f32 %v936_v21, %v934_v20  ;;  %v938_v27 = vpop.eup %937  ;;  %v144_v31 = vmul.f32 0.0, %v936_v21 }
  0xa3   :  { %v138_v30 = vadd.f32 1.0, %v938_v27 }
  0xa4   :  { %147 = vrot.lane.b32.xlu0 %v145_v22, %s1040_s1 }
  0xa5   :  { %939 = vrcp.f32 %v138_v30 }
  0xb2   :  { %v940_v37 = vpop.eup %939 }
 0x116   :  { %v148_v33 = vpop.permute.xlu0 %147 }
 0x117   :  { %v150_v35 = vadd.f32 %v148_v33, %v144_v31 }
 0x119   :  { %941 = vtanh.f32 %v150_v35  ;;  %163 = vrot.lane.b32.xlu0 %v150_v35, %s1040_s1 }
 0x126   :  { %v942_v38 = vpop.eup %941 }
 0x127   :  { %v152_v39 = vmul.f32 %v942_v38, %v940_v37 }
 0x129   :  { %157 = vrot.lane.b32.xlu1 %v152_v39, %s1040_s1 }
 0x12d   :  { %36 = vperm.xlu1 %918, %v21_v40  }
 0x18b   :  { %v164_v42 = vpop.permute.xlu0 %163 }
 0x18c   :  { %v166_v43 = vsel %vm155_vm0, %v164_v42, 0.0 }
 0x18d   :  { %266 = vrot.lane.b32.xlu1 %v166_v43, %s1040_s1  ;;  %v23_v43 = vld [vmem:[%s1302_s0 + $0x18] sm:$0xff] }
 0x19b   :  { %v158_v44 = vpop.permute.xlu1 %157 }
 0x19c   :  { %v160_v45 = vsel %vm155_vm0, %v158_v44, 0.0 }
 0x19d   :  { %v161_v46 = vpack.c.bf16 %v160_v45, %v160_v45 }
 0x19f   :  { %870 = vmatmul.mubr.msk.bf16.vlgmr.msra.gmra.mxu0 %vm207_vm1, %v161_v46 }
 0x1a0   :  { %364 = vmatpush1.bf16.msra.mxu0 %v1104_v25  ;;  %387 = vmatprep.mubr.bf16.mxu0 %v1039_v0 }
 0x1a1   :  { %365 = vmatprep.subr.bf16.mxu0 %v1110_v26 }
 0x1a4   :  { %366 = vmatpush1.bf16.msra.mxu0 %v1117_v28 }
 0x1a5   :  { %367 = vmatprep.subr.bf16.mxu0 %v1124_v29 }
 0x1a8   :  { %368 = vmatpush1.bf16.msra.mxu0 %v1131_v32  ;;  %v37_v47 = vpop.permute.xlu1 %36 }
 0x1a9   :  { %369 = vmatprep.subr.bf16.mxu0 %v1138_v34  ;;  %v82_v48 = vmul.f32 %v1083_v7, %v37_v47  ;;  %v83_v56 = vmul.f32 %v1089_v14, %v37_v47 }
 0x1ab   :  { %v109_v49 = vadd.f32 %v1085_v8, %v82_v48  ;;  %v110_v57 = vadd.f32 %v1091_v15, %v83_v56 }
 0x1ac   :  { %370 = vmatpush1.bf16.msra.mxu0 %v1148_v36 }
 0x1ad   :  { %503 = vmatprep.subr.bf16.mxu0 %v1099_v24 }
 0x1ff   :  { %v267_v4 = vpop.permute.xlu1 %266 }
 0x25f   :  { %v245_v50 = vpop.f32.mrf.mxu0 }
 0x260   :  { %v246_v51 = vadd.f32 %v245_v50, %v109_v49 }
 0x261   :  { %v247_v52 = vpop.f32.mrf.mxu0 }
 0x262   :  { %v871_v53 = vmul.f32 -1.442695, %v246_v51  ;;  %v248_v58 = vadd.f32 %v247_v52, %v110_v57 }
 0x263   :  { %v249_v54 = vpop.f32.mrf.mxu0 }
 0x264   :  { %943 = vpow2.f32 %v871_v53  ;;  %v872_v2 = vmul.f32 -1.442695, %v248_v58 }
 0x265   :  { %v250_v55 = vpop.f32.mrf.mxu0  ;;  %945 = vtanh.f32 %v248_v58 }
 0x271   :  { %v944_v59 = vpop.eup %943 }
 0x272   :  { %v258_v60 = vadd.f32 1.0, %v944_v59  ;;  %v946_v61 = vpop.eup %945 }
 0x274   :  { %947 = vrcp.f32 %v258_v60 }
 0x275   :  { %949 = vpow2.f32 %v872_v2 }
 0x281   :  { %v948_v62 = vpop.eup %947 }
 0x282   :  { %v270_v63 = vmul.f32 %v948_v62, %v946_v61  ;;  %v950_v3 = vpop.eup %949  ;;  %v269_v6 = vmul.f32 %v948_v62, %v267_v4 }
 0x283   :  { %v259_v5 = vadd.f32 1.0, %v950_v3 }
 0x284   :  { %272 = vrot.lane.b32.xlu0 %v270_v63, %s1040_s1 }
 0x285   :  { %951 = vrcp.f32 %v259_v5 }
 0x288   :  { %41 = vperm.xlu0 %917, %v22_v1  }
 0x292   :  { %v952_v11 = vpop.eup %951 }
 0x2f6   :  { %v273_v9 = vpop.permute.xlu0 %272 }
 0x2f7   :  { %v275_v10 = vadd.f32 %v273_v9, %v269_v6 }
 0x2f9   :  { %953 = vtanh.f32 %v275_v10 }
 0x303   :  { %v42_v18 = vpop.permute.xlu0 %41 }
 0x304   :  { %v84_v19 = vmul.f32 %v1083_v7, %v42_v18  ;;  %v85_v33 = vmul.f32 %v1089_v14, %v42_v18 }
 0x306   :  { %v954_v12 = vpop.eup %953  ;;  %v111_v20 = vadd.f32 %v1085_v8, %v84_v19  ;;  %v112_v35 = vadd.f32 %v1091_v15, %v85_v33 }
 0x307   :  { %v277_v13 = vmul.f32 %v954_v12, %v952_v11  ;;  %v24_v11 = vld [vmem:[%s1302_s0 + $0x20] sm:$0xff] }
 0x309   :  { %v278_v16 = vpack.c.bf16 %v277_v13, %v277_v13 }
 0x30b   :  { %280 = vrot.lane.b32.xlu1 %v278_v16, %s1040_s1 }
 0x37d   :  { %v281_v17 = vpop.permute.xlu1 %280 }
 0x37e   :  { %873 = vmatmul.mubr.msk.bf16.vlgmr.msra.gmra.mxu1 %vm207_vm1, %v281_v17 }
 0x37f   :  { %434 = vmatpush1.bf16.msra.mxu1 %v1104_v25  ;;  %457 = vmatprep.mubr.bf16.mxu1 %v1039_v0 }
 0x380   :  { %435 = vmatprep.subr.bf16.mxu1 %v1110_v26 }
 0x383   :  { %436 = vmatpush1.bf16.msra.mxu1 %v1117_v28 }
 0x384   :  { %437 = vmatprep.subr.bf16.mxu1 %v1124_v29 }
 0x387   :  { %438 = vmatpush1.bf16.msra.mxu1 %v1131_v32 }
 0x388   :  { %439 = vmatprep.subr.bf16.mxu1 %v1138_v34 }
 0x38b   :  { %440 = vmatpush1.bf16.msra.mxu1 %v1148_v36 }
 0x38c   :  { %573 = vmatprep.subr.bf16.mxu1 %v1099_v24 }
 0x43e   :  { %v319_v21 = vpop.f32.mrf.mxu1 }
 0x43f   :  { %v320_v22 = vadd.f32 %v319_v21, %v111_v20 }
 0x440   :  { %v321_v23 = vpop.f32.mrf.mxu1 }
 0x441   :  { %v874_v27 = vmul.f32 -1.442695, %v320_v22  ;;  %v322_v37 = vadd.f32 %v321_v23, %v112_v35 }
 0x442   :  { %v323_v30 = vpop.f32.mrf.mxu1 }
 0x443   :  { %955 = vpow2.f32 %v874_v27  ;;  %v875_v44 = vmul.f32 -1.442695, %v322_v37 }
 0x444   :  { %v324_v31 = vpop.f32.mrf.mxu1  ;;  %957 = vtanh.f32 %v322_v37 }
 0x450   :  { %v956_v38 = vpop.eup %955 }
 0x451   :  { %v332_v39 = vadd.f32 1.0, %v956_v38  ;;  %v958_v40 = vpop.eup %957 }
 0x453   :  { %959 = vrcp.f32 %v332_v39 }
 0x454   :  { %961 = vpow2.f32 %v875_v44 }
 0x460   :  { %v960_v41 = vpop.eup %959 }
 0x461   :  { %v340_v42 = vmul.f32 %v960_v41, %v958_v40  ;;  %v962_v45 = vpop.eup %961  ;;  %v339_v47 = vmul.f32 %v960_v41, %v275_v10 }
 0x462   :  { %v333_v46 = vadd.f32 1.0, %v962_v45 }
 0x463   :  { %342 = vrot.lane.b32.xlu1 %v340_v42, %s1040_s1 }
 0x464   :  { %963 = vrcp.f32 %v333_v46 }
 0x467   :  { %46 = vperm.xlu1 %918, %v23_v43  }
 0x471   :  { %v964_v50 = vpop.eup %963 }
 0x4d5   :  { %v343_v48 = vpop.permute.xlu1 %342 }
 0x4d6   :  { %v345_v49 = vadd.f32 %v343_v48, %v339_v47 }
 0x4d8   :  { %965 = vtanh.f32 %v345_v49 }
 0x4e2   :  { %v47_v55 = vpop.permute.xlu1 %46 }
 0x4e3   :  { %v86_v56 = vmul.f32 %v1083_v7, %v47_v55  ;;  %v87_v1 = vmul.f32 %v1089_v14, %v47_v55 }
 0x4e5   :  { %v966_v51 = vpop.eup %965  ;;  %v113_v57 = vadd.f32 %v1085_v8, %v86_v56  ;;  %v114_v2 = vadd.f32 %v1091_v15, %v87_v1 }
 0x4e6   :  { %v347_v52 = vmul.f32 %v966_v51, %v964_v50 }
 0x4e8   :  { %v348_v53 = vpack.c.bf16 %v347_v52, %v347_v52 }
 0x4ea   :  { %350 = vrot.lane.b32.xlu0 %v348_v53, %s1040_s1 }
 0x55c   :  { %v351_v54 = vpop.permute.xlu0 %350 }
 0x55d   :  { %876 = vmatmul.mubr.msk.bf16.vlgmr.msra.gmra.mxu0 %vm207_vm1, %v351_v54 }
 0x55e   :  { %504 = vmatpush1.bf16.msra.mxu0 %v1104_v25  ;;  %527 = vmatprep.mubr.bf16.mxu0 %v1039_v0 }
 0x55f   :  { %505 = vmatprep.subr.bf16.mxu0 %v1110_v26 }
 0x562   :  { %506 = vmatpush1.bf16.msra.mxu0 %v1117_v28 }
 0x563   :  { %507 = vmatprep.subr.bf16.mxu0 %v1124_v29 }
 0x566   :  { %508 = vmatpush1.bf16.msra.mxu0 %v1131_v32 }
 0x567   :  { %509 = vmatprep.subr.bf16.mxu0 %v1138_v34 }
 0x56a   :  { %510 = vmatpush1.bf16.msra.mxu0 %v1148_v36 }
 0x56b   :  { %643 = vmatprep.subr.bf16.mxu0 %v1099_v24 }
 0x61d   :  { %v389_v58 = vpop.f32.mrf.mxu0 }
 0x61e   :  { %v390_v59 = vadd.f32 %v389_v58, %v113_v57 }
 0x61f   :  { %v391_v60 = vpop.f32.mrf.mxu0 }
 0x620   :  { %v877_v61 = vmul.f32 -1.442695, %v390_v59  ;;  %v392_v3 = vadd.f32 %v391_v60, %v114_v2 }
 0x621   :  { %v393_v62 = vpop.f32.mrf.mxu0 }
 0x622   :  { %967 = vpow2.f32 %v877_v61  ;;  %v878_v12 = vmul.f32 -1.442695, %v392_v3 }
 0x623   :  { %v394_v63 = vpop.f32.mrf.mxu0  ;;  %969 = vtanh.f32 %v392_v3 }
 0x62f   :  { %v968_v4 = vpop.eup %967 }
 0x630   :  { %v402_v5 = vadd.f32 1.0, %v968_v4  ;;  %v970_v6 = vpop.eup %969 }
 0x632   :  { %971 = vrcp.f32 %v402_v5 }
 0x633   :  { %973 = vpow2.f32 %v878_v12 }
 0x63f   :  { %v972_v9 = vpop.eup %971 }
 0x640   :  { %v410_v10 = vmul.f32 %v972_v9, %v970_v6  ;;  %v974_v13 = vpop.eup %973  ;;  %v409_v17 = vmul.f32 %v972_v9, %v345_v49  ;;  %v25_v49 = vld [vmem:[%s1302_s0 + $0x28] sm:$0xff] }
 0x641   :  { %v403_v16 = vadd.f32 1.0, %v974_v13 }
 0x642   :  { %412 = vrot.lane.b32.xlu0 %v410_v10, %s1040_s1 }
 0x643   :  { %975 = vrcp.f32 %v403_v16 }
 0x646   :  { %51 = vperm.xlu0 %917, %v24_v11  }
 0x650   :  { %v976_v20 = vpop.eup %975 }
 0x6b4   :  { %v413_v18 = vpop.permute.xlu0 %412 }
 0x6b5   :  { %v415_v19 = vadd.f32 %v413_v18, %v409_v17 }
 0x6b7   :  { %977 = vtanh.f32 %v415_v19 }
 0x6c1   :  { %v52_v30 = vpop.permute.xlu0 %51 }
 0x6c2   :  { %v88_v31 = vmul.f32 %v1083_v7, %v52_v30  ;;  %v89_v42 = vmul.f32 %v1089_v14, %v52_v30 }
 0x6c4   :  { %v978_v21 = vpop.eup %977  ;;  %v115_v33 = vadd.f32 %v1085_v8, %v88_v31  ;;  %v116_v43 = vadd.f32 %v1091_v15, %v89_v42 }
 0x6c5   :  { %v417_v22 = vmul.f32 %v978_v21, %v976_v20 }
 0x6c7   :  { %v418_v23 = vpack.c.bf16 %v417_v22, %v417_v22 }
 0x6c9   :  { %420 = vrot.lane.b32.xlu1 %v418_v23, %s1040_s1 }
 0x73b   :  { %v421_v27 = vpop.permute.xlu1 %420 }
 0x73c   :  { %879 = vmatmul.mubr.msk.bf16.vlgmr.msra.gmra.mxu1 %vm207_vm1, %v421_v27 }
 0x73d   :  { %574 = vmatpush1.bf16.msra.mxu1 %v1104_v25  ;;  %597 = vmatprep.mubr.bf16.mxu1 %v1039_v0 }
 0x73e   :  { %575 = vmatprep.subr.bf16.mxu1 %v1110_v26 }
 0x741   :  { %576 = vmatpush1.bf16.msra.mxu1 %v1117_v28 }
 0x742   :  { %577 = vmatprep.subr.bf16.mxu1 %v1124_v29 }
 0x745   :  { %578 = vmatpush1.bf16.msra.mxu1 %v1131_v32 }
 0x746   :  { %579 = vmatprep.subr.bf16.mxu1 %v1138_v34 }
 0x749   :  { %580 = vmatpush1.bf16.msra.mxu1 %v1148_v36 }
 0x74a   :  { %713 = vmatprep.subr.bf16.mxu1 %v1099_v24 }
 0x7fc   :  { %v459_v35 = vpop.f32.mrf.mxu1 }
 0x7fd   :  { %v460_v37 = vadd.f32 %v459_v35, %v115_v33 }
 0x7fe   :  { %v461_v38 = vpop.f32.mrf.mxu1 }
 0x7ff   :  { %v880_v39 = vmul.f32 -1.442695, %v460_v37  ;;  %v462_v44 = vadd.f32 %v461_v38, %v116_v43 }
 0x800   :  { %v463_v40 = vpop.f32.mrf.mxu1 }
 0x801   :  { %979 = vpow2.f32 %v880_v39  ;;  %v881_v50 = vmul.f32 -1.442695, %v462_v44 }
 0x802   :  { %v464_v41 = vpop.f32.mrf.mxu1  ;;  %981 = vtanh.f32 %v462_v44 }
 0x80e   :  { %v980_v45 = vpop.eup %979 }
 0x80f   :  { %v472_v46 = vadd.f32 1.0, %v980_v45  ;;  %v982_v24 = vpop.eup %981 }
 0x811   :  { %983 = vrcp.f32 %v472_v46 }
 0x812   :  { %985 = vpow2.f32 %v881_v50 }
 0x81e   :  { %v984_v47 = vpop.eup %983 }
 0x81f   :  { %v480_v48 = vmul.f32 %v984_v47, %v982_v24  ;;  %v986_v51 = vpop.eup %985  ;;  %v479_v53 = vmul.f32 %v984_v47, %v415_v19  ;;  %v26_v19 = vld [vmem:[%s1302_s0 + $0x30] sm:$0xff]  ;;  %v27_v47 = vld [vmem:[%s1302_s0 + $0x38] sm:$0xff] }
 0x820   :  { %v473_v52 = vadd.f32 1.0, %v986_v51 }
 0x821   :  { %482 = vrot.lane.b32.xlu1 %v480_v48, %s1040_s1 }
 0x822   :  { %987 = vrcp.f32 %v473_v52 }
 0x825   :  { %56 = vperm.xlu1 %918, %v25_v49  }
 0x82f   :  { %v988_v56 = vpop.eup %987 }
 0x893   :  { %v483_v54 = vpop.permute.xlu1 %482 }
 0x894   :  { %v485_v55 = vadd.f32 %v483_v54, %v479_v53 }
 0x896   :  { %989 = vtanh.f32 %v485_v55 }
 0x8a0   :  { %v57_v61 = vpop.permute.xlu1 %56 }
 0x8a1   :  { %v90_v62 = vmul.f32 %v1083_v7, %v57_v61  ;;  %v91_v9 = vmul.f32 %v1089_v14, %v57_v61 }
 0x8a3   :  { %v990_v57 = vpop.eup %989  ;;  %v117_v63 = vadd.f32 %v1085_v8, %v90_v62  ;;  %v118_v10 = vadd.f32 %v1091_v15, %v91_v9 }
 0x8a4   :  { %v487_v58 = vmul.f32 %v990_v57, %v988_v56 }
 0x8a6   :  { %v488_v59 = vpack.c.bf16 %v487_v58, %v487_v58 }
 0x8a8   :  { %490 = vrot.lane.b32.xlu0 %v488_v59, %s1040_s1 }
 0x91a   :  { %v491_v60 = vpop.permute.xlu0 %490 }
 0x91b   :  { %882 = vmatmul.mubr.msk.bf16.vlgmr.msra.gmra.mxu0 %vm207_vm1, %v491_v60 }
 0x91c   :  { %644 = vmatpush1.bf16.msra.mxu0 %v1104_v25  ;;  %667 = vmatprep.mubr.bf16.mxu0 %v1039_v0 }
 0x91d   :  { %645 = vmatprep.subr.bf16.mxu0 %v1110_v26 }
 0x920   :  { %646 = vmatpush1.bf16.msra.mxu0 %v1117_v28 }
 0x921   :  { %647 = vmatprep.subr.bf16.mxu0 %v1124_v29 }
 0x924   :  { %648 = vmatpush1.bf16.msra.mxu0 %v1131_v32 }
 0x925   :  { %649 = vmatprep.subr.bf16.mxu0 %v1138_v34 }
 0x928   :  { %650 = vmatpush1.bf16.msra.mxu0 %v1148_v36 }
 0x9db   :  { %v529_v1 = vpop.f32.mrf.mxu0 }
 0x9dc   :  { %v530_v2 = vadd.f32 %v529_v1, %v117_v63 }
 0x9dd   :  { %v531_v3 = vpop.f32.mrf.mxu0 }
 0x9de   :  { %v883_v4 = vmul.f32 -1.442695, %v530_v2  ;;  %v532_v11 = vadd.f32 %v531_v3, %v118_v10 }
 0x9df   :  { %v533_v5 = vpop.f32.mrf.mxu0 }
 0x9e0   :  { %991 = vpow2.f32 %v883_v4  ;;  %v884_v20 = vmul.f32 -1.442695, %v532_v11 }
 0x9e1   :  { %v534_v6 = vpop.f32.mrf.mxu0  ;;  %993 = vtanh.f32 %v532_v11 }
 0x9ed   :  { %v992_v12 = vpop.eup %991 }
 0x9ee   :  { %v542_v13 = vadd.f32 1.0, %v992_v12  ;;  %v994_v16 = vpop.eup %993 }
 0x9f0   :  { %995 = vrcp.f32 %v542_v13 }
 0x9f1   :  { %997 = vpow2.f32 %v884_v20 }
 0x9fd   :  { %v996_v17 = vpop.eup %995 }
 0x9fe   :  { %v550_v18 = vmul.f32 %v996_v17, %v994_v16  ;;  %v998_v21 = vpop.eup %997  ;;  %v549_v23 = vmul.f32 %v996_v17, %v485_v55 }
 0x9ff   :  { %v543_v22 = vadd.f32 1.0, %v998_v21 }
 0xa00   :  { %552 = vrot.lane.b32.xlu0 %v550_v18, %s1040_s1 }
 0xa01   :  { %999 = vrcp.f32 %v543_v22 }
 0xa04   :  { %61 = vperm.xlu0 %917, %v26_v19  }
 0xa0e   :  { %v1000_v31 = vpop.eup %999 }
 0xa72   :  { %v553_v27 = vpop.permute.xlu0 %552 }
 0xa73   :  { %v555_v30 = vadd.f32 %v553_v27, %v549_v23 }
 0xa75   :  { %1001 = vtanh.f32 %v555_v30 }
 0xa7f   :  { %v62_v39 = vpop.permute.xlu0 %61 }
 0xa80   :  { %v92_v40 = vmul.f32 %v1083_v7, %v62_v39 }
 0xa82   :  { %v1002_v33 = vpop.eup %1001  ;;  %v119_v41 = vadd.f32 %v1085_v8, %v92_v40 }
 0xa83   :  { %v557_v35 = vmul.f32 %v1002_v33, %v1000_v31 }
 0xa85   :  { %v558_v37 = vpack.c.bf16 %v557_v35, %v557_v35 }
 0xa87   :  { %560 = vrot.lane.b32.xlu1 %v558_v37, %s1040_s1 }
 0xaf9   :  { %v561_v38 = vpop.permute.xlu1 %560 }
 0xafa   :  { %885 = vmatmul.mubr.msk.bf16.vlgmr.msra.gmra.mxu1 %vm207_vm1, %v561_v38 }
 0xafb   :  { %714 = vmatpush1.bf16.msra.mxu1 %v1104_v25  ;;  %737 = vmatprep.mubr.bf16.mxu1 %v1039_v0 }
 0xafc   :  { %715 = vmatprep.subr.bf16.mxu1 %v1110_v26 }
 0xaff   :  { %716 = vmatpush1.bf16.msra.mxu1 %v1117_v28 }
 0xb00   :  { %717 = vmatprep.subr.bf16.mxu1 %v1124_v29  ;;  %v93_v29 = vmul.f32 %v1089_v14, %v62_v39 }
 0xb03   :  { %718 = vmatpush1.bf16.msra.mxu1 %v1131_v32  ;;  %v120_v32 = vadd.f32 %v1091_v15, %v93_v29  ;;  %v768_v29 = vld [vmem:[%s1305_s3] sm:$0xff] }
 0xb04   :  { %719 = vmatprep.subr.bf16.mxu1 %v1138_v34 }
 0xb07   :  { %720 = vmatpush1.bf16.msra.mxu1 %v1148_v36 }
 0xbba   :  { %v599_v25 = vpop.f32.mrf.mxu1 }
 0xbbb   :  { %v600_v42 = vadd.f32 %v599_v25, %v119_v41 }
 0xbbc   :  { %v601_v0 = vpop.f32.mrf.mxu1 }
 0xbbd   :  { %v886_v43 = vmul.f32 -1.442695, %v600_v42  ;;  %v602_v44 = vadd.f32 %v601_v0, %v120_v32 }
 0xbbe   :  { %v603_v26 = vpop.f32.mrf.mxu1 }
 0xbbf   :  { %1003 = vpow2.f32 %v886_v43  ;;  %v887_v48 = vmul.f32 -1.442695, %v602_v44  ;;  %v1041_v26 = vmov 0.0  }
 0xbc0   :  { %v604_v28 = vpop.f32.mrf.mxu1  ;;  %1005 = vtanh.f32 %v602_v44  ;;  %901 = vmatprep.subr.mxu0 %v1041_v26 }
 0xbc1   :  { %v770_v28 = vld [vmem:[%s1305_s3 + $0x10] sm:$0xff] }
 0xbcc   :  { %v1004_v34 = vpop.eup %1003 }
 0xbcd   :  { %v612_v45 = vadd.f32 1.0, %v1004_v34  ;;  %v1006_v36 = vpop.eup %1005 }
 0xbcf   :  { %1007 = vrcp.f32 %v612_v45 }
 0xbd0   :  { %1009 = vpow2.f32 %v887_v48 }
 0xbdc   :  { %v1008_v46 = vpop.eup %1007 }
 0xbdd   :  { %v620_v24 = vmul.f32 %v1008_v46, %v1006_v36  ;;  %v1010_v49 = vpop.eup %1009  ;;  %v619_v51 = vmul.f32 %v1008_v46, %v555_v30 }
 0xbde   :  { %v613_v50 = vadd.f32 1.0, %v1010_v49 }
 0xbdf   :  { %622 = vrot.lane.b32.xlu1 %v620_v24, %s1040_s1 }
 0xbe0   :  { %1011 = vrcp.f32 %v613_v50  ;;  %v894_v50 = vld [vmem:[%s1305_s3 + $0x20] ss:$0 sm:$0xff] }
 0xbe3   :  { %66 = vperm.xlu1 %918, %v27_v47  }
 0xbed   :  { %v1012_v54 = vpop.eup %1011 }
 0xc51   :  { %v623_v52 = vpop.permute.xlu1 %622 }
 0xc52   :  { %v625_v53 = vadd.f32 %v623_v52, %v619_v51 }
 0xc54   :  { %1013 = vtanh.f32 %v625_v53 }
 0xc5e   :  { %v67_v59 = vpop.permute.xlu1 %66 }
 0xc5f   :  { %v94_v60 = vmul.f32 %v1083_v7, %v67_v59  ;;  %v95_v5 = vmul.f32 %v1089_v14, %v67_v59 }
 0xc61   :  { %v1014_v55 = vpop.eup %1013  ;;  %v121_v61 = vadd.f32 %v1085_v8, %v94_v60  ;;  %v122_v6 = vadd.f32 %v1091_v15, %v95_v5 }
 0xc62   :  { %v627_v56 = vmul.f32 %v1014_v55, %v1012_v54 }
 0xc64   :  { %v628_v57 = vpack.c.bf16 %v627_v56, %v627_v56 }
 0xc66   :  { %630 = vrot.lane.b32.xlu0 %v628_v57, %s1040_s1 }
 0xcd8   :  { %v631_v58 = vpop.permute.xlu0 %630 }
 0xcd9   :  { %888 = vmatmul.mubr.msk.bf16.vlgmr.msra.gmra.mxu0 %vm207_vm1, %v631_v58 }
 0xcda   :  { %909 = vmatprep.mubr.msk.f32.mxu0 %vm1042_vm2, %v1041_v26 }
 0xd99   :  { %v669_v62 = vpop.f32.mrf.mxu0 }
 0xd9a   :  { %v670_v63 = vadd.f32 %v669_v62, %v121_v61 }
 0xd9b   :  { %v671_v1 = vpop.f32.mrf.mxu0 }
 0xd9c   :  { %v889_v2 = vmul.f32 -1.442695, %v670_v63  ;;  %v672_v9 = vadd.f32 %v671_v1, %v122_v6 }
 0xd9d   :  { %v673_v3 = vpop.f32.mrf.mxu0 }
 0xd9e   :  { %1015 = vpow2.f32 %v889_v2  ;;  %v890_v16 = vmul.f32 -1.442695, %v672_v9 }
 0xd9f   :  { %v674_v4 = vpop.f32.mrf.mxu0  ;;  %1017 = vtanh.f32 %v672_v9 }
 0xdab   :  { %v1016_v10 = vpop.eup %1015 }
 0xdac   :  { %v682_v11 = vadd.f32 1.0, %v1016_v10  ;;  %v1018_v12 = vpop.eup %1017 }
 0xdae   :  { %1019 = vrcp.f32 %v682_v11 }
 0xdaf   :  { %1021 = vpow2.f32 %v890_v16 }
 0xdbb   :  { %v1020_v7 = vpop.eup %1019 }
 0xdbc   :  { %v690_v13 = vmul.f32 %v1020_v7, %v1018_v12  ;;  %v1022_v17 = vpop.eup %1021  ;;  %v689_v19 = vmul.f32 %v1020_v7, %v625_v53 }
 0xdbd   :  { %v683_v18 = vadd.f32 1.0, %v1022_v17 }
 0xdbe   :  { %692 = vrot.lane.b32.xlu0 %v690_v13, %s1040_s1 }
 0xdbf   :  { %1023 = vrcp.f32 %v683_v18 }
 0xdcc   :  { %v1024_v14 = vpop.eup %1023 }
 0xe30   :  { %v693_v20 = vpop.permute.xlu0 %692 }
 0xe31   :  { %v695_v21 = vadd.f32 %v693_v20, %v689_v19 }
 0xe33   :  { %1025 = vtanh.f32 %v695_v21 }
 0xe40   :  { %v1026_v22 = vpop.eup %1025 }
 0xe41   :  { %v697_v23 = vmul.f32 %v1026_v22, %v1024_v14 }
 0xe43   :  { %v698_v27 = vpack.c.bf16 %v697_v23, %v697_v23 }
 0xe45   :  { %700 = vrot.lane.b32.xlu1 %v698_v27, %s1040_s1 }
 0xeb7   :  { %v701_v30 = vpop.permute.xlu1 %700 }
 0xeb8   :  { %891 = vmatmul.mubr.msk.bf16.vlgmr.msra.gmra.mxu1 %vm207_vm1, %v701_v30 }
 0xf78   :  { %v739_v31 = vpop.f32.mrf.mxu1 }
 0xf79   :  { %v740_v33 = vadd.f32 %v739_v31, %v1085_v8  ;;  %v771_v8 = vld [vmem:[%s1305_s3 + $0x18] sm:$0xff] }
 0xf7a   :  { %v741_v35 = vpop.f32.mrf.mxu1  ;;  %902 = vmatpush3.msra.mxu0 %v771_v8 }
 0xf7b   :  { %v892_v37 = vmul.f32 -1.442695, %v740_v33  ;;  %v742_v40 = vadd.f32 %v741_v35, %v1091_v15  ;;  %903 = vmatprep.subr.mxu0 %v1041_v26  ;;  %v769_v15 = vld [vmem:[%s1305_s3 + $0x8] sm:$0xff] }
 0xf7c   :  { %v743_v38 = vpop.f32.mrf.mxu1  ;;  %904 = vmatpush3.msra.mxu0 %v770_v28 }
 0xf7d   :  { %1027 = vpow2.f32 %v892_v37  ;;  %905 = vmatprep.subr.mxu0 %v1041_v26  ;;  %v893_v32 = vmul.f32 -1.442695, %v742_v40 }
 0xf7e   :  { %v744_v39 = vpop.f32.mrf.mxu1  ;;  %1029 = vtanh.f32 %v742_v40  ;;  %906 = vmatpush3.msra.mxu0 %v769_v15 }
 0xf7f   :  { %907 = vmatprep.subr.mxu0 %v1041_v26 }
 0xf80   :  { %908 = vmatpush3.msra.mxu0 %v768_v29 }
 0xf8a   :  { %v1028_v41 = vpop.eup %1027 }
 0xf8b   :  { %v752_v25 = vadd.f32 1.0, %v1028_v41  ;;  %v1030_v42 = vpop.eup %1029 }
 0xf8d   :  { %1031 = vrcp.f32 %v752_v25 }
 0xf8e   :  { %1033 = vpow2.f32 %v893_v32 }
 0xf9a   :  { %v1032_v0 = vpop.eup %1031 }
 0xf9b   :  { %v760_v43 = vmul.f32 %v1032_v0, %v1030_v42  ;;  %v1034_v44 = vpop.eup %1033  ;;  %v759_v45 = vmul.f32 %v1032_v0, %v695_v21 }
 0xf9c   :  { %v753_v34 = vadd.f32 1.0, %v1034_v44 }
 0xf9d   :  { %762 = vrot.lane.b32.xlu0 %v760_v43, %s1040_s1 }
 0xf9e   :  { %1035 = vrcp.f32 %v753_v34 }
 0xfab   :  { %v1036_v24 = vpop.eup %1035 }
0x100f   :  { %v763_v36 = vpop.permute.xlu0 %762 }
0x1010   :  { %v765_v46 = vadd.f32 %v763_v36, %v759_v45 }
0x1012   :  { %1037 = vtanh.f32 %v765_v46 }
0x101f   :  { %v1038_v47 = vpop.eup %1037 }
0x1020   :  { %v767_v48 = vmul.f32 %v1038_v47, %v1036_v24 }
0x1022   :  { %778 = vrot.lane.b32.xlu1 %v767_v48, %s1043_s30 }
0x1094   :  { %v779_v49 = vpop.permute.xlu1 %778 }
0x1095   :  { %910 = vmatmul.mubr.msk.f32.vlgmr.msra.gmra.mxu0 %vm780_vm3, %v779_v49 }
0x1155   :  { %v849_v51 = vpop.f32.mrf.mxu0 }
0x1156   :  { %v850_v52 = vadd.f32 %v894_v50, %v849_v51 }
0x1157   :  { %v911_v53 = vpop.f32.mrf.mxu0 }
0x1158   :  { %854 = vst.msk [vmem:[%s1306_s4] sm:$0xff] %vm853_vm4, %v850_v52 }

</bundles_post_ra>
